<compile_context>
chip_gen: v7x
topology: tpu7x:2x2x1
jax: 0.10.0
libtpu: 0.0.40
codegen_flags: <defaults>
</compile_context>

<pallas_src>
import functools

import jax
import jax.numpy as jnp
from jax.experimental import pallas as pl
from jax.experimental.pallas import tpu as pltpu

_LANE = 128     # last-dim (lane) granularity
_SUBLANE = 8    # second-to-last (sublane) granularity


def _round_up(n, m):
    return ((n + m - 1) // m) * m


def _pad_to(x, shape):
    pads = [(0, s - d) for d, s in zip(x.shape, shape)]
    if all(p == (0, 0) for p in pads):
        return x
    return jnp.pad(x, pads)


def _mlp_kernel(*refs, num_layers: int):
    """Fused MLP body for one batch tile.

    refs = (x_ref, w0_ref, b0_ref, w1_ref, b1_ref, ..., o_ref)
    x/W are bf16 (MXU-native), biases f32; every dot accumulates in f32.
    Intermediate activations never leave VMEM/vregs.
    """
    x_ref = refs[0]
    o_ref = refs[-1]
    wb_refs = refs[1:-1]

    h = x_ref[...]                                 # (TB, K0) bf16
    for layer in range(num_layers):
        w = wb_refs[2 * layer][...]                # (K_pad, N_pad) bf16
        b = wb_refs[2 * layer + 1][...]            # (1, N_pad)     f32
        acc = jnp.dot(h, w, preferred_element_type=jnp.float32) + b
        if layer != num_layers - 1:                # ReLU on hidden layers only
            h = jnp.maximum(acc, 0.0).astype(jnp.bfloat16)
        else:
            h = acc                                # final layer: no activation
    o_ref[...] = h.astype(o_ref.dtype)


def init_mlp_params(key, num_input, num_output, layer_shape, dtype=jnp.float32):
    """Init mirroring nn.Linear default (uniform +-1/sqrt(fan_in)).

    Returns list of (W, b) with W shaped (in, out)  (pre-transposed vs torch).
    """
    dims = [num_input] + list(layer_shape) + [num_output]
    params = []
    for i in range(1, len(dims)):
        fan_in, fan_out = dims[i - 1], dims[i]
        key, kw, kb = jax.random.split(key, 3)
        bound = 1.0 / jnp.sqrt(jnp.asarray(fan_in, dtype))
        w = jax.random.uniform(kw, (fan_in, fan_out), dtype, -bound, bound)
        b = jax.random.uniform(kb, (fan_out,), dtype, -bound, bound)
        params.append((w, b))
    return params


def prepare_padded_params(params):
    """One-time prep: pad output (N) dims to 128 and cast weights to bf16.

    The contraction dim of layer 0 (= num_input) is NOT padded; for later
    layers K_pad equals the previous layer's N_pad.  Zero padding is exact:
    padded output columns stay 0 through ReLU and contribute nothing later.
    Biases are kept f32 (added after the f32-accumulated dot).
    """
    dims = [params[0][0].shape[0]] + [w.shape[1] for w, _ in params]
    dims_p = [dims[0]] + [_round_up(d, _LANE) for d in dims[1:]]
    padded = []
    for i, (w, b) in enumerate(params):
        w_p = _pad_to(w, (dims_p[i], dims_p[i + 1])).astype(jnp.bfloat16)
        b_p = _pad_to(b.reshape(1, -1), (1, dims_p[i + 1])).astype(jnp.float32)
        padded.append((w_p, b_p))
    return padded, dims, dims_p


def mlp_forward(x, padded_params, dims, dims_p, block_batch=128):
    """Fused forward pass: one pallas_call for the whole MLP, tiled over batch."""
    batch = x.shape[0]
    num_layers = len(padded_params)

    # Batch tile: multiple of 8 sublanes; pad batch up to a whole number of tiles.
    tb = max(_round_up(min(block_batch, batch), _SUBLANE), _SUBLANE)
    batch_p = _round_up(batch, tb)
    num_tiles = batch_p // tb

    # bf16 activation input; feature (K) dim left unpadded.
    x_p = _pad_to(x.astype(jnp.bfloat16), (batch_p, dims[0]))

    flat_inputs = [x_p]
    for w_p, b_p in padded_params:
        flat_inputs.append(w_p)
        flat_inputs.append(b_p)

    # Weights/biases are grid-invariant (constant index_map) -> keep them
    # VMEM-resident and single-buffered.  NOTE: index_maps below capture
    # nothing from the loop, avoiding the late-binding-lambda bug.
    wb_specs = []
    for arr in flat_inputs[1:]:
        wb_specs.append(
            pl.BlockSpec(arr.shape, lambda i: (0, 0), pipeline_mode=pl.Buffered(1))
        )

    in_specs = [pl.BlockSpec((tb, dims[0]), lambda i: (i, 0))] + wb_specs
    out_spec = pl.BlockSpec((tb, dims_p[-1]), lambda i: (i, 0))

    # VMEM budget: resident weights/biases (single-buffered) + double-buffered
    # activation/output tiles, with headroom.  Keep >=32 MiB (beats v5e's 16 MiB
    # default scoped cap) and <=64 MiB (valid on v7x's 64 MiB physical VMEM).
    resident_bytes = sum(int(a.size) * a.dtype.itemsize for a in flat_inputs[1:])
    stream_bytes = 2 * (tb * dims[0] * 2 + tb * dims_p[-1] * 4)
    vmem_limit = min(max(4 * (resident_bytes + stream_bytes), 32 * 1024 * 1024),
                     64 * 1024 * 1024)

    kernel = functools.partial(_mlp_kernel, num_layers=num_layers)

    out_p = pl.pallas_call(
        kernel,
        out_shape=jax.ShapeDtypeStruct((batch_p, dims_p[-1]), jnp.float32),
        grid_spec=pltpu.PrefetchScalarGridSpec(
            num_scalar_prefetch=0,
            grid=(num_tiles,),
            in_specs=in_specs,
            out_specs=out_spec,
        ),
        compiler_params=pltpu.CompilerParams(
            dimension_semantics=("parallel",),
            vmem_limit_bytes=int(vmem_limit),
        ),
    )(*flat_inputs)

    # Slice the real (batch, num_output) result back out of the padded slab.
    return out_p[:batch, : dims[-1]]


if __name__ == "__main__":
    key = jax.random.PRNGKey(0)
    k_param, k_x = jax.random.split(key)

    # Small shapes consistent with the module:
    # mlp(num_input=32, num_output=8, layer_shape=[64, 64]), batch of 32.
    num_input, num_output = 32, 8
    layer_shape = [64, 64]
    batch = 32

    params = init_mlp_params(k_param, num_input, num_output, layer_shape)
    padded_params, dims, dims_p = prepare_padded_params(params)
    x = jax.random.normal(k_x, (batch, num_input), dtype=jnp.float32)

    # block_batch=16 -> grid of 2 batch tiles, exercising the pipelined grid.
    fwd = jax.jit(functools.partial(mlp_forward, dims=dims, dims_p=dims_p,
                                    block_batch=16))
    out = fwd(x, padded_params)
    out = jax.block_until_ready(out)

    # Reference check (plain f32 JAX on the unpadded params) — same math; the
    # kernel uses bf16 MXU operands with f32 accumulation, so allow ~bf16 error.
    ref = x
    for i, (w, b) in enumerate(params):
        ref = ref @ w + b
        if i != len(params) - 1:
            ref = jnp.maximum(ref, 0.0)

    assert out.shape == (batch, num_output)
    assert jnp.allclose(out, ref, atol=5e-2, rtol=5e-2), (
        float(jnp.max(jnp.abs(out - ref))))

    print("KERNEL_OK")
</pallas_src>

<mosaic_0001>
module attributes {stable_mosaic.version = 11 : i64} {
  func.func @_mlp_kernel(%arg0: i32, %arg1: memref<16x32xbf16, #tpu.memory_space<vmem>>, %arg2: memref<32x128xbf16, #tpu.memory_space<vmem>>, %arg3: memref<1x128xf32, #tpu.memory_space<vmem>>, %arg4: memref<128x128xbf16, #tpu.memory_space<vmem>>, %arg5: memref<1x128xf32, #tpu.memory_space<vmem>>, %arg6: memref<128x128xbf16, #tpu.memory_space<vmem>>, %arg7: memref<1x128xf32, #tpu.memory_space<vmem>>, %arg8: memref<16x128xf32, #tpu.memory_space<vmem>>) attributes {dimension_semantics = [#tpu.dimension_semantics<parallel>], iteration_bounds = array<i64: 2>, scalar_prefetch = 0 : i64, scratch_operands = 0 : i64, tpu.core_type = #tpu.core_type<tc>, window_params = [{transform_indices = @transform_0, window_bounds = array<i64: 16, 32>}, {pipeline_mode = #tpu.pipeline_mode<synchronous>, transform_indices = @transform_1, window_bounds = array<i64: 32, 128>}, {pipeline_mode = #tpu.pipeline_mode<synchronous>, transform_indices = @transform_2, window_bounds = array<i64: 1, 128>}, {pipeline_mode = #tpu.pipeline_mode<synchronous>, transform_indices = @transform_3, window_bounds = array<i64: 128, 128>}, {pipeline_mode = #tpu.pipeline_mode<synchronous>, transform_indices = @transform_4, window_bounds = array<i64: 1, 128>}, {pipeline_mode = #tpu.pipeline_mode<synchronous>, transform_indices = @transform_5, window_bounds = array<i64: 128, 128>}, {pipeline_mode = #tpu.pipeline_mode<synchronous>, transform_indices = @transform_6, window_bounds = array<i64: 1, 128>}, {transform_indices = @transform_7, window_bounds = array<i64: 16, 128>}]} {
    %c0 = arith.constant 0 : index
    %c0_0 = arith.constant 0 : index
    %0 = vector.load %arg1[%c0, %c0_0] : memref<16x32xbf16, #tpu.memory_space<vmem>>, vector<16x32xbf16>
    %c0_1 = arith.constant 0 : index
    %c0_2 = arith.constant 0 : index
    %1 = vector.load %arg2[%c0_1, %c0_2] : memref<32x128xbf16, #tpu.memory_space<vmem>>, vector<32x128xbf16>
    %c0_3 = arith.constant 0 : index
    %c0_4 = arith.constant 0 : index
    %2 = vector.load %arg3[%c0_3, %c0_4] : memref<1x128xf32, #tpu.memory_space<vmem>>, vector<1x128xf32>
    %cst = arith.constant dense<0.000000e+00> : vector<16x128xf32>
    %3 = tpu.matmul %0, %1, %cst {dimension_numbers = #tpu.dot_dimension_numbers<[1], [0], [0], [1], [0, 0, 1, 1], [], []>} : vector<16x32xbf16>, vector<32x128xbf16>, vector<16x128xf32> -> vector<16x128xf32>
    %4 = vector.broadcast %2 : vector<1x128xf32> to vector<16x128xf32>
    %5 = arith.addf %3, %4 : vector<16x128xf32>
    %cst_5 = arith.constant 0.000000e+00 : f32
    %6 = vector.broadcast %cst_5 : f32 to vector<16x128xf32>
    %7 = arith.maximumf %5, %6 : vector<16x128xf32>
    %8 = arith.truncf %7 : vector<16x128xf32> to vector<16x128xbf16>
    %c0_6 = arith.constant 0 : index
    %c0_7 = arith.constant 0 : index
    %9 = vector.load %arg4[%c0_6, %c0_7] : memref<128x128xbf16, #tpu.memory_space<vmem>>, vector<128x128xbf16>
    %c0_8 = arith.constant 0 : index
    %c0_9 = arith.constant 0 : index
    %10 = vector.load %arg5[%c0_8, %c0_9] : memref<1x128xf32, #tpu.memory_space<vmem>>, vector<1x128xf32>
    %cst_10 = arith.constant dense<0.000000e+00> : vector<16x128xf32>
    %11 = tpu.matmul %8, %9, %cst_10 {dimension_numbers = #tpu.dot_dimension_numbers<[1], [0], [0], [1], [0, 0, 1, 1], [], []>} : vector<16x128xbf16>, vector<128x128xbf16>, vector<16x128xf32> -> vector<16x128xf32>
    %12 = vector.broadcast %10 : vector<1x128xf32> to vector<16x128xf32>
    %13 = arith.addf %11, %12 : vector<16x128xf32>
    %cst_11 = arith.constant 0.000000e+00 : f32
    %14 = vector.broadcast %cst_11 : f32 to vector<16x128xf32>
    %15 = arith.maximumf %13, %14 : vector<16x128xf32>
    %16 = arith.truncf %15 : vector<16x128xf32> to vector<16x128xbf16>
    %c0_12 = arith.constant 0 : index
    %c0_13 = arith.constant 0 : index
    %17 = vector.load %arg6[%c0_12, %c0_13] : memref<128x128xbf16, #tpu.memory_space<vmem>>, vector<128x128xbf16>
    %c0_14 = arith.constant 0 : index
    %c0_15 = arith.constant 0 : index
    %18 = vector.load %arg7[%c0_14, %c0_15] : memref<1x128xf32, #tpu.memory_space<vmem>>, vector<1x128xf32>
    %cst_16 = arith.constant dense<0.000000e+00> : vector<16x128xf32>
    %19 = tpu.matmul %16, %17, %cst_16 {dimension_numbers = #tpu.dot_dimension_numbers<[1], [0], [0], [1], [0, 0, 1, 1], [], []>} : vector<16x128xbf16>, vector<128x128xbf16>, vector<16x128xf32> -> vector<16x128xf32>
    %20 = vector.broadcast %18 : vector<1x128xf32> to vector<16x128xf32>
    %21 = arith.addf %19, %20 : vector<16x128xf32>
    %c0_17 = arith.constant 0 : index
    %c0_18 = arith.constant 0 : index
    %22 = vector.load %arg8[%c0_17, %c0_18] : memref<16x128xf32, #tpu.memory_space<vmem>>, vector<16x128xf32>
    tpu.vector_store %arg8[%c0_17, %c0_18], %21 {strides = array<i32>} : memref<16x128xf32, #tpu.memory_space<vmem>>, vector<16x128xf32>,
    return
  }
  func.func @transform_0(%arg0: i32) -> (i32, i32) {
    %c0_i32 = arith.constant 0 : i32
    %c0_i32_0 = arith.constant 0 : i32
    return %arg0, %c0_i32 : i32, i32
  }
  func.func @transform_1(%arg0: i32) -> (i32, i32) {
    %c0_i32 = arith.constant 0 : i32
    %c0_i32_0 = arith.constant 0 : i32
    %c0_i32_1 = arith.constant 0 : i32
    return %c0_i32, %c0_i32_0 : i32, i32
  }
  func.func @transform_2(%arg0: i32) -> (i32, i32) {
    %c0_i32 = arith.constant 0 : i32
    %c0_i32_0 = arith.constant 0 : i32
    %c0_i32_1 = arith.constant 0 : i32
    return %c0_i32, %c0_i32_0 : i32, i32
  }
  func.func @transform_3(%arg0: i32) -> (i32, i32) {
    %c0_i32 = arith.constant 0 : i32
    %c0_i32_0 = arith.constant 0 : i32
    %c0_i32_1 = arith.constant 0 : i32
    return %c0_i32, %c0_i32_0 : i32, i32
  }
  func.func @transform_4(%arg0: i32) -> (i32, i32) {
    %c0_i32 = arith.constant 0 : i32
    %c0_i32_0 = arith.constant 0 : i32
    %c0_i32_1 = arith.constant 0 : i32
    return %c0_i32, %c0_i32_0 : i32, i32
  }
  func.func @transform_5(%arg0: i32) -> (i32, i32) {
    %c0_i32 = arith.constant 0 : i32
    %c0_i32_0 = arith.constant 0 : i32
    %c0_i32_1 = arith.constant 0 : i32
    return %c0_i32, %c0_i32_0 : i32, i32
  }
  func.func @transform_6(%arg0: i32) -> (i32, i32) {
    %c0_i32 = arith.constant 0 : i32
    %c0_i32_0 = arith.constant 0 : i32
    %c0_i32_1 = arith.constant 0 : i32
    return %c0_i32, %c0_i32_0 : i32, i32
  }
  func.func @transform_7(%arg0: i32) -> (i32, i32) {
    %c0_i32 = arith.constant 0 : i32
    %c0_i32_0 = arith.constant 0 : i32
    return %arg0, %c0_i32 : i32, i32
  }
}

</mosaic_0001>

<bundles_post_ra>
// kernel: mlp_forward.1
= control target key start
LH: loop header
LB: loop body
LE: loop exit
PB: predicated region body
PF: predicated region fallthrough
CT: control target
= control target key end

     0   :  { %12 = vsyncpa [#allocation3], 0  ;;  %s1132_s0 = inlined_call_operand.vmem [shape: bf16[32,32], index: 0, kind: input, shape index: {}]   ;;  %s1133_s1 = inlined_call_operand.hbm [shape: bf16[32,128], index: 1, kind: input, shape index: {}]   ;;  %s1134_s2 = inlined_call_operand.vmem [shape: f32[1,128], index: 2, kind: input, shape index: {}]   ;;  %s1135_s3 = inlined_call_operand.hbm [shape: bf16[128,128], index: 3, kind: input, shape index: {}]   ;;  %s1136_s4 = inlined_call_operand.vmem [shape: f32[1,128], index: 4, kind: input, shape index: {}]   ;;  %s1137_s5 = inlined_call_operand.vmem [shape: bf16[128,128], index: 5, kind: input, shape index: {}]   ;;  %s1138_s6 = inlined_call_operand.vmem [shape: f32[1,128], index: 6, kind: input, shape index: {}]   ;;  %s1139_s7 = inlined_call_operand.vmem [shape: f32[32,128], index: 7, kind: output, shape index: {}]  }
   0x1   :  { %13 = vsyncpa [#allocation5], 0  ;;  %s975_s24 = smov 0  }
   0x2 LB: > { %s698_s25 = sadd.s32 4294967295, %s927_s24   ;;  %p700_p0 = scmp.ge.s32.totalorder %s927_s24, 1  ;;  %s927_s24 = sphi %s975_s24, %s19_s24  }
   0x3   : > { %p202_p1 = scmp.lt.s32.totalorder %s927_s24, 3  ;;  %s929_s26 = smov [#allocation2]  }
   0x4   : > { %s214_s27 = sshll.u32 %s929_s26, 4  ;;  %p989_p3 = scmp.eq.s32.totalorder %s698_s25, 0  ;;  %s215_s27 = int_to_ptr.vmem [resolvable:$true] %s214_s27 }
   0x5   : > { %p983_p2 = pnand %p700_p0, %p202_p1  ;;  %s930_s30 = smov [#allocation4]  }
   0x6   : > { %s1144_s29 = scalar_select %p989_p3, 1, 0 }
   0x7   : > { %s1143_s28 = scalar_select %p983_p2, 1, 0 }
   0x8   : > { %p813_p4 = pneg %p983_p2  ;;  %s230_s8 = sshll.u32 %s930_s30, 4  ;;  %s1001_s8 = int_to_ptr.vmem [resolvable:$true] %s230_s8 }
   0x9   : > { %s857_s12 = scalar_lea.hbm %s1133_s1, 256 }
   0xa   : > { %p997_p5 = pnand %p989_p3, %p813_p4  ;;  %p858_p6 = scmp.ne.s32.totalorder %s1133_s1, %s857_s12 }
   0xb   : > { %p864_p10 = scmp.lt.u32.totalorder %s857_s12, %s1133_s1 }
   0xc   : > { %p859_p7 = pneg %p997_p5 }
   0xe   : > { %p860_p8 = pnand %p859_p7, %p858_p6 }
  0x10   : > { %p861_p9 = pneg %p860_p8 }
  0x12   : > { %p866_p11 = pnand %p864_p10, %p861_p9 }
  0x14   : > { %869 = shalt.err (!%p866_p11)
}
  0x15   : > { %s870_s17 = scalar_lea.vmem %s215_s27, 256  ;;  %p878_p1 = scmp.lt.s32.totalorder %s215_s27, %s215_s27 }
  0x16   : > { %p871_p12 = scmp.ne.s32.totalorder %s215_s27, %s870_s17  ;;  %p879_p4 = scmp.lt.s32.totalorder %s870_s17, %s870_s17 }
  0x18   : > { %p873_p13 = pnand %p871_p12, %p859_p7  ;;  %p880_p3 = por %p879_p4, %p878_p1 }
  0x1a   : > { %p874_p0 = pneg %p873_p13 }
  0x1c   : > { %p881_p2 = pnand %p880_p3, %p874_p0 }
  0x1e   : > { %884 = shalt.err (!%p881_p2)
}
  0x1f   : > { %s931_s18 = smov 64   ;;  %s932_s19 = smov 4  }
  0x20   : > { %816 = dma.hbm_to_vmem [thread:$0]  (!%p997_p5), %s1133_s1, 256, %s215_s27, [#allocation3], %s931_s18, %s931_s18, %s932_s19  }
  0x21   : > { %s885_s26 = scalar_lea.hbm %s1135_s3, 1024 }
  0x22   : > { %p886_p6 = scmp.ne.s32.totalorder %s1135_s3, %s885_s26  ;;  %p892_p8 = scmp.lt.u32.totalorder %s885_s26, %s1135_s3 }
  0x24   : > { %p888_p2 = pnand %p886_p6, %p859_p7 }
  0x26   : > { %p889_p3 = pneg %p888_p2 }
  0x28   : > { %p894_p9 = pnand %p892_p8, %p889_p3 }
  0x2a   : > { %897 = shalt.err (!%p894_p9)
}
  0x2b   : > { %s898_s27 = scalar_lea.vmem %s1001_s8, 1024  ;;  %p906_p13 = scmp.lt.s32.totalorder %s1001_s8, %s1001_s8 }
  0x2c   : > { %p899_p10 = scmp.ne.s32.totalorder %s1001_s8, %s898_s27  ;;  %p907_p0 = scmp.lt.s32.totalorder %s898_s27, %s898_s27 }
  0x2e   : > { %p901_p11 = pnand %p899_p10, %p859_p7  ;;  %p908_p1 = por %p907_p0, %p906_p13 }
  0x30   : > { %p902_p12 = pneg %p901_p11 }
  0x32   : > { %p909_p4 = pnand %p908_p1, %p902_p12 }
  0x34   : > { %912 = shalt.err (!%p909_p4)
}
  0x35   : > { %819 = dma.hbm_to_vmem [thread:$0]  (!%p997_p5), %s1135_s3, 1024, %s1001_s8, [#allocation5], %s931_s18, %s931_s18, %s932_s19  }
  0x36   : > { %p1146_p6 = scmp.ne.s32.totalorder %s1143_s28, 0 }
  0x37   : > { %p1147_p2 = scmp.ne.s32.totalorder (!%p1146_p6), %s1144_s29, 0 }
  0x38   : > { %264 = sbr.rel (%p1146_p6) target bundleno = 733 (0x2dd), region = 48 }
  0x3f   : > { %918 = dma.done.wait (%p1147_p2), [#allocation3], 256  }
  0x40   : > { %920 = vsyncadd (%p1147_p2), [#allocation3], 4294967040 }
  0x41   : > { %922 = dma.done.wait (%p1147_p2), [#allocation5], 1024  }
  0x42   : > { %924 = vsyncadd (%p1147_p2), [#allocation5], 4294966272  ;;  %s707_s9 = sshll.u32 %s698_s25, 1  ;;  %v933_v0 = vmov 0.0   ;;  %vm934_vm0 = vmmov 0   ;;  %v838_v1 = vld [vmem:[#allocation2] sm:$0xff]  }
  0x43   : > { %757 = vmatprep.subr.bf16.mxu0 %v933_v0  ;;  %761 = vmatprep.mubr.msk.bf16.mxu0 %vm934_vm0, %v933_v0  ;;  %p301_p5 = scmp.lt.s32.totalorder %s707_s9, 3  ;;  %v839_v2 = vld [vmem:[#allocation2 + $0x8] sm:$0xff]   ;;  %v841_v3 = vld [vmem:[#allocation4] sm:$0xff]   ;;  %v842_v5 = vld [vmem:[#allocation4 + $0x8] sm:$0xff]   ;;  %vm343_vm1 = vcmask 261120  }
  0x44   : > { %765 = vmatprep.subr.bf16.mxu1 %v933_v0  ;;  %781 = vmatprep.mubr.msk.bf16.mxu1 %vm934_vm0, %v933_v0  ;;  %v843_v6 = vld [vmem:[#allocation4 + $0x10] sm:$0xff]   ;;  %v844_v7 = vld [vmem:[#allocation4 + $0x18] sm:$0xff]   ;;  %v845_v8 = vld [vmem:[#allocation4 + $0x20] sm:$0xff]  }
  0x45   : > { %s1149_s9 = smov (!%p301_p5, %s707_s9), 3  ;;  %758 = vmatpush3.bf16.msra.mxu0 %v838_v1  ;;  %766 = vmatpush3.bf16.msra.mxu1 %v841_v3  ;;  %v846_v9 = vld [vmem:[#allocation4 + $0x28] sm:$0xff]   ;;  %v847_v10 = vld [vmem:[#allocation4 + $0x30] sm:$0xff]   ;;  %v848_v11 = vld [vmem:[#allocation4 + $0x38] sm:$0xff]  }
  0x46   : > { %s708_s28 = sshll.u32 %s1149_s9, 2  ;;  %759 = vmatprep.subr.bf16.mxu0 %v933_v0  ;;  %767 = vmatprep.subr.bf16.mxu1 %v933_v0  ;;  %v849_v12 = vld [vmem:[%s1137_s5] sm:$0xff]   ;;  %v850_v13 = vld [vmem:[%s1137_s5 + $0x8] sm:$0xff]   ;;  %v851_v14 = vld [vmem:[%s1137_s5 + $0x10] sm:$0xff]  }
  0x47   : > { %s304_s8 = scalar_lea.vmem %s1132_s0, %s708_s28  ;;  %v852_v15 = vld [vmem:[%s1137_s5 + $0x18] sm:$0xff]   ;;  %v853_v16 = vld [vmem:[%s1137_s5 + $0x20] sm:$0xff]   ;;  %v854_v17 = vld [vmem:[%s1137_s5 + $0x28] sm:$0xff]  }
  0x48   : > { %v840_v4 = vld [vmem:[%s304_s8] sm:$0xff]   ;;  %v855_v28 = vld [vmem:[%s1137_s5 + $0x30] sm:$0xff]   ;;  %v856_v29 = vld [vmem:[%s1137_s5 + $0x38] sm:$0xff]   ;;  %s710_s8 = sshll.u32 %s1149_s9, 3 }
  0x49   : > { %760 = vmatpush3.bf16.msra.mxu0 %v839_v2  ;;  %768 = vmatpush3.bf16.msra.mxu1 %v842_v5  ;;  %v711_v18 = vld [vmem:[%s1134_s2] ss:$0 sm:$0xff]  ;;  %s310_s19 = scalar_lea.vmem %s1139_s7, %s710_s8 }
  0x4a   : > { %785 = vmatprep.subr.bf16.mxu0 %v933_v0  ;;  %769 = vmatprep.subr.bf16.mxu1 %v933_v0  ;;  %v716_v30 = vld [vmem:[%s1136_s4] ss:$0 sm:$0xff] }
  0x4b   : > { %v725_v40 = vld [vmem:[%s1138_s6] ss:$0 sm:$0xff] }
  0x4c   : > { %762 = vmatmul.mubr.msk.bf16.vlgmr.msra.gmra.mrb[0].mxu0 %vm343_vm1, %v840_v4 }
  0x4d   : > { %801 = vmatprep.mubr.msk.bf16.mxu0 %vm934_vm0, %v933_v0  ;;  %770 = vmatpush3.bf16.msra.mxu1 %v843_v6 }
  0x4e   : > { %771 = vmatprep.subr.bf16.mxu1 %v933_v0  ;;  %786 = vmatpush3.bf16.msra.mxu0 %v849_v12 }
  0x4f   : > { %787 = vmatprep.subr.bf16.mxu0 %v933_v0 }
  0x51   : > { %772 = vmatpush3.bf16.msra.mxu1 %v844_v7 }
  0x52   : > { %773 = vmatprep.subr.bf16.mxu1 %v933_v0  ;;  %788 = vmatpush3.bf16.msra.mxu0 %v850_v13 }
  0x53   : > { %789 = vmatprep.subr.bf16.mxu0 %v933_v0 }
  0x55   : > { %774 = vmatpush3.bf16.msra.mxu1 %v845_v8 }
  0x56   : > { %775 = vmatprep.subr.bf16.mxu1 %v933_v0  ;;  %790 = vmatpush3.bf16.msra.mxu0 %v851_v14 }
  0x57   : > { %791 = vmatprep.subr.bf16.mxu0 %v933_v0 }
  0x59   : > { %776 = vmatpush3.bf16.msra.mxu1 %v846_v9 }
  0x5a   : > { %777 = vmatprep.subr.bf16.mxu1 %v933_v0  ;;  %792 = vmatpush3.bf16.msra.mxu0 %v852_v15 }
  0x5b   : > { %793 = vmatprep.subr.bf16.mxu0 %v933_v0 }
  0x5d   : > { %778 = vmatpush3.bf16.msra.mxu1 %v847_v10 }
  0x5e   : > { %779 = vmatprep.subr.bf16.mxu1 %v933_v0  ;;  %794 = vmatpush3.bf16.msra.mxu0 %v853_v16 }
  0x5f   : > { %795 = vmatprep.subr.bf16.mxu0 %v933_v0 }
  0x61   : > { %780 = vmatpush3.bf16.msra.mxu1 %v848_v11 }
  0x62   : > { %796 = vmatpush3.bf16.msra.mxu0 %v854_v17 }
  0x63   : > { %797 = vmatprep.subr.bf16.mxu0 %v933_v0 }
  0x66   : > { %798 = vmatpush3.bf16.msra.mxu0 %v855_v28 }
  0x67   : > { %799 = vmatprep.subr.bf16.mxu0 %v933_v0 }
  0x6a   : > { %800 = vmatpush3.bf16.msra.mxu0 %v856_v29 }
 0x11f   : > { %v381_v19 = vpop.f32.mrb[0].mxu0 }
 0x120   : > { %v382_v20 = vadd.f32 %v711_v18, %v381_v19  ;;  %v763_v21 = vpop.f32.mrb[1].mxu0 }
 0x121   : > { %v384_v22 = vpop.f32.mrb[2].mxu0 }
 0x122   : > { %v385_v23 = vadd.f32 %v711_v18, %v384_v22  ;;  %v764_v24 = vpop.f32.mrb[3].mxu0  ;;  %v388_v25 = vmax.f32 %v382_v20, 0.0 }
 0x124   : > { %v389_v26 = vmax.f32 %v385_v23, 0.0 }
 0x126   : > { %v390_v27 = vpack.c.bf16 %v389_v26, %v388_v25 }
 0x128   : > { %782 = vmatmul.mubr.bf16.vlgmr.msra.gmra.mrb[0].mxu1 %v390_v27 }
 0x1fb   : > { %v496_v31 = vpop.f32.mrb[0].mxu1 }
 0x1fc   : > { %v497_v32 = vadd.f32 %v716_v30, %v496_v31  ;;  %v783_v33 = vpop.f32.mrb[1].mxu1 }
 0x1fd   : > { %v499_v34 = vpop.f32.mrb[2].mxu1 }
 0x1fe   : > { %v500_v35 = vadd.f32 %v716_v30, %v499_v34  ;;  %v784_v36 = vpop.f32.mrb[3].mxu1  ;;  %v503_v37 = vmax.f32 %v497_v32, 0.0 }
 0x200   : > { %v504_v38 = vmax.f32 %v500_v35, 0.0 }
 0x202   : > { %v505_v39 = vpack.c.bf16 %v504_v38, %v503_v37 }
 0x204   : > { %802 = vmatmul.mubr.bf16.vlgmr.msra.gmra.mrb[4].mxu0 %v505_v39 }
 0x2d7   : > { %v611_v41 = vpop.f32.mrb[4].mxu0 }
 0x2d8   : > { %v612_v42 = vadd.f32 %v725_v40, %v611_v41  ;;  %v803_v43 = vpop.f32.mrb[5].mxu0 }
 0x2d9   : > { %v614_v44 = vpop.f32.mrb[6].mxu0 }
 0x2da   : > { %618 = vst [vmem:[%s310_s19] sm:$0xff] %v612_v42  ;;  %v615_v45 = vadd.f32 %v725_v40, %v614_v44  ;;  %v804_v46 = vpop.f32.mrb[7].mxu0 }
 0x2dc   : > { %619 = vst [vmem:[%s310_s19 + $0x8] sm:$0xff] %v615_v45 }
 0x2dd PF: > { %s19_s24 = sadd.s32 1, %s927_s24  }
 0x2de   : > { %p16_p7 = scmp.ge.s32.totalorder %s19_s24, 4  }
 0x2e0   :  { %18 = sbr.rel (!%p16_p7) target bundleno = 2 (0x2), region = 87 }
 0x2e7   :  { %642 = vsyncpa [#allocation3], 1 }
 0x2e8   :  { %644 = vsyncpa [#allocation3 + $0x1], 1 }
 0x2e9   :  { %645 = vsyncpa [#allocation5], 1 }

</bundles_post_ra>
